<compile_context>
chip_gen: v7x
topology: tpu7x:2x2x1
jax: 0.10.0
libtpu: 0.0.40
codegen_flags: <defaults>
</compile_context>

<pallas_src>
import math

import numpy as np
import jax
import jax.numpy as jnp
from jax.experimental import pallas as pl
from jax.experimental.pallas import tpu as pltpu

_EPS = 1e-5  # PyTorch nn.InstanceNorm2d default


def _instnorm_kernel(x_ref, g_ref, b_ref, o_ref):
    # x_ref: (TBC, HW) rows = fused (batch, channel) planes, cols = H*W pixels
    # g_ref, b_ref: (C, 1) per-channel affine (resident) or (TBC, 1) streamed.
    x = x_ref[...].astype(jnp.float32)
    hw = x.shape[1]
    inv_hw = 1.0 / hw

    # Pass 1: first and second moment sums in a single sweep over the block.
    s1 = jnp.sum(x, axis=1, keepdims=True)          # (TBC, 1)
    s2 = jnp.sum(x * x, axis=1, keepdims=True)      # (TBC, 1)
    mean = s1 * inv_hw
    # Biased variance via E[x^2] - mean^2; clamp rounding-induced negatives.
    var = jnp.maximum(s2 * inv_hw - mean * mean, 0.0)

    g = g_ref[...].astype(jnp.float32)
    b = b_ref[...].astype(jnp.float32)
    reps = x.shape[0] // g.shape[0]
    if reps > 1:  # per-channel params -> per-row column (static, tiny tile)
        g = jnp.tile(g, (reps, 1))
        b = jnp.tile(b, (reps, 1))

    scale = g * jax.lax.rsqrt(var + _EPS)            # (TBC, 1)
    shift = b - mean * scale                         # (TBC, 1)

    # Pass 2: single fused scale+shift sweep.
    o_ref[...] = (x * scale + shift).astype(o_ref.dtype)


def _choose_rows_per_block(bc, hw, c, itemsize, budget=4 << 20):
    """Pick the number of fused (b, c) rows per block.

    Targets a ~4 MiB x-block (2x in + 2x out double-buffered -> ~16 MiB, well
    under the explicit 32 MiB VMEM limit), aligned to the dtype's sublane
    packing, preferably a multiple of C so gamma/beta can stay resident as
    (C, 1), and capped so large tensors get >= 2 grid steps (v7x megacore).

    Returns (tbc, resident_affine).
    """
    sub = {4: 8, 2: 16, 1: 32}.get(itemsize, 8)      # sublane packing per dtype
    row_bytes = hw * itemsize
    rows_budget = max(int(budget // row_bytes), 1)

    # Prefer >= 2 grid steps when the tensor is large enough to split.
    if bc >= 2 * sub:
        rows_budget = min(rows_budget, max(-(-bc // 2), sub))

    lcm_cs = sub * c // math.gcd(sub, c)
    if rows_budget >= lcm_cs:
        tbc = (rows_budget // lcm_cs) * lcm_cs
        tbc = min(tbc, -(-bc // lcm_cs) * lcm_cs)    # no bigger than needed
        return tbc, True
    if rows_budget >= sub:
        tbc = (rows_budget // sub) * sub
        tbc = min(tbc, -(-bc // sub) * sub)
        return tbc, False
    # Even the minimum (sub, HW) tile exceeds the budget (very large H*W).
    # TODO(synk): an HW-tiled two-pass variant is needed to stay inside VMEM
    #             for such shapes (notably on v7x's 64 MiB VMEM).
    return sub, False


def pre_norm(x, gamma, beta, fn=lambda y: y):
    """x: (B, C, H, W); gamma, beta: (C,).  Returns fn(InstanceNorm2d(x))."""
    B, C, H, W = x.shape
    BC, HW = B * C, H * W

    x2 = x.reshape(BC, HW)                           # free, contiguous reshape
    g32 = gamma.astype(jnp.float32).reshape(C, 1)    # keep affine in f32
    b32 = beta.astype(jnp.float32).reshape(C, 1)

    tbc, resident = _choose_rows_per_block(BC, HW, C, x2.dtype.itemsize)
    grid = (pl.cdiv(BC, tbc),)

    if resident:
        # Per-channel params, constant index_map -> fetched once, resident.
        g_arr, b_arr = g32, b32
        gb_spec = pl.BlockSpec((C, 1), lambda i: (0, 0))
    else:
        # Rare fallback (tbc cannot be a multiple of C under the VMEM budget):
        # stream per-row params alongside x.
        g_arr = jnp.tile(g32, (B, 1))
        b_arr = jnp.tile(b32, (B, 1))
        gb_spec = pl.BlockSpec((tbc, 1), lambda i: (i, 0))

    out2 = pl.pallas_call(
        _instnorm_kernel,
        out_shape=jax.ShapeDtypeStruct((BC, HW), x.dtype),
        grid=grid,
        in_specs=[
            pl.BlockSpec((tbc, HW), lambda i: (i, 0)),
            gb_spec,
            gb_spec,
        ],
        out_specs=pl.BlockSpec((tbc, HW), lambda i: (i, 0)),
        compiler_params=pltpu.CompilerParams(
            dimension_semantics=("parallel",),
            vmem_limit_bytes=32 * 1024 * 1024),
    )(x2, g_arr, b_arr)

    out = out2.reshape(B, C, H, W)
    # TODO(synk): fuse elementwise / matmul-leading `fn` into the kernel
    #             epilogue to avoid an extra HBM round trip.
    return fn(out)


def _reference(x, gamma, beta, fn=lambda y: y):
    """Pure-JAX reference matching nn.InstanceNorm2d(affine=True)."""
    xf = x.astype(jnp.float32)
    mean = jnp.mean(xf, axis=(2, 3), keepdims=True)
    var = jnp.var(xf, axis=(2, 3), keepdims=True)
    xn = (xf - mean) * jax.lax.rsqrt(var + _EPS)
    out = xn * gamma[None, :, None, None] + beta[None, :, None, None]
    return fn(out.astype(x.dtype))


def _run_case(key, B, C, H, W):
    kx, kg, kb = jax.random.split(key, 3)
    x = jax.random.normal(kx, (B, C, H, W), dtype=jnp.float32)
    gamma = 1.0 + 0.1 * jax.random.normal(kg, (C,), dtype=jnp.float32)
    beta = 0.1 * jax.random.normal(kb, (C,), dtype=jnp.float32)

    out = jax.block_until_ready(pre_norm(x, gamma, beta))
    ref = jax.block_until_ready(_reference(x, gamma, beta))
    np.testing.assert_allclose(np.asarray(out), np.asarray(ref),
                               rtol=1e-5, atol=1e-5)


if __name__ == "__main__":
    key = jax.random.PRNGKey(0)
    k1, k2 = jax.random.split(key)

    # Main case (matches the module's natural small shapes): grid=1, reps=2.
    _run_case(k1, B=2, C=4, H=16, W=16)
    # Larger-batch case: exercises grid >= 2 (megacore path) and in-kernel
    # per-channel -> per-row affine tiling.
    _run_case(k2, B=4, C=4, H=16, W=16)

    print("KERNEL_OK")
</pallas_src>

<mosaic_0001>
module attributes {stable_mosaic.version = 11 : i64} {
  func.func @_instnorm_kernel(%arg0: i32, %arg1: memref<8x256xf32, #tpu.memory_space<vmem>>, %arg2: memref<4x1xf32, #tpu.memory_space<vmem>>, %arg3: memref<4x1xf32, #tpu.memory_space<vmem>>, %arg4: memref<8x256xf32, #tpu.memory_space<vmem>>) attributes {dimension_semantics = [#tpu.dimension_semantics<parallel>], iteration_bounds = array<i64: 1>, scalar_prefetch = 0 : i64, scratch_operands = 0 : i64, tpu.core_type = #tpu.core_type<tc>, window_params = [{transform_indices = @transform_0, window_bounds = array<i64: 8, 256>}, {pipeline_mode = #tpu.pipeline_mode<synchronous>, transform_indices = @transform_1, window_bounds = array<i64: 4, 1>}, {pipeline_mode = #tpu.pipeline_mode<synchronous>, transform_indices = @transform_2, window_bounds = array<i64: 4, 1>}, {transform_indices = @transform_3, window_bounds = array<i64: 8, 256>}]} {
    %c0 = arith.constant 0 : index
    %c0_0 = arith.constant 0 : index
    %0 = vector.load %arg1[%c0, %c0_0] : memref<8x256xf32, #tpu.memory_space<vmem>>, vector<8x256xf32>
    %cst = arith.constant dense<0.000000e+00> : vector<8xf32>
    %1 = vector.multi_reduction <add>, %0, %cst [1] : vector<8x256xf32> to vector<8xf32>
    %2 = vector.shape_cast %1 : vector<8xf32> to vector<8x1xf32>
    %3 = arith.mulf %0, %0 : vector<8x256xf32>
    %cst_1 = arith.constant dense<0.000000e+00> : vector<8xf32>
    %4 = vector.multi_reduction <add>, %3, %cst_1 [1] : vector<8x256xf32> to vector<8xf32>
    %5 = vector.shape_cast %4 : vector<8xf32> to vector<8x1xf32>
    %cst_2 = arith.constant 3.906250e-03 : f32
    %6 = vector.broadcast %cst_2 : f32 to vector<8x1xf32>
    %7 = arith.mulf %2, %6 : vector<8x1xf32>
    %cst_3 = arith.constant 3.906250e-03 : f32
    %8 = vector.broadcast %cst_3 : f32 to vector<8x1xf32>
    %9 = arith.mulf %5, %8 : vector<8x1xf32>
    %10 = arith.mulf %7, %7 : vector<8x1xf32>
    %11 = arith.subf %9, %10 : vector<8x1xf32>
    %cst_4 = arith.constant 0.000000e+00 : f32
    %12 = vector.broadcast %cst_4 : f32 to vector<8x1xf32>
    %13 = arith.maximumf %11, %12 : vector<8x1xf32>
    %c0_5 = arith.constant 0 : index
    %c0_6 = arith.constant 0 : index
    %14 = vector.load %arg2[%c0_5, %c0_6] : memref<4x1xf32, #tpu.memory_space<vmem>>, vector<4x1xf32>
    %c0_7 = arith.constant 0 : index
    %c0_8 = arith.constant 0 : index
    %15 = vector.load %arg3[%c0_7, %c0_8] : memref<4x1xf32, #tpu.memory_space<vmem>>, vector<4x1xf32>
    %16 = tpu.concatenate %14, %14 in 0 : vector<4x1xf32>, vector<4x1xf32> -> vector<8x1xf32>
    %17 = tpu.concatenate %15, %15 in 0 : vector<4x1xf32>, vector<4x1xf32> -> vector<8x1xf32>
    %cst_9 = arith.constant 9.99999974E-6 : f32
    %18 = vector.broadcast %cst_9 : f32 to vector<8x1xf32>
    %19 = arith.addf %13, %18 : vector<8x1xf32>
    %20 = math.rsqrt %19 : vector<8x1xf32>
    %21 = arith.mulf %16, %20 : vector<8x1xf32>
    %22 = arith.mulf %7, %21 : vector<8x1xf32>
    %23 = arith.subf %17, %22 : vector<8x1xf32>
    %24 = vector.broadcast %21 : vector<8x1xf32> to vector<8x256xf32>
    %25 = arith.mulf %0, %24 : vector<8x256xf32>
    %26 = vector.broadcast %23 : vector<8x1xf32> to vector<8x256xf32>
    %27 = arith.addf %25, %26 : vector<8x256xf32>
    %c0_10 = arith.constant 0 : index
    %c0_11 = arith.constant 0 : index
    %28 = vector.load %arg4[%c0_10, %c0_11] : memref<8x256xf32, #tpu.memory_space<vmem>>, vector<8x256xf32>
    tpu.vector_store %arg4[%c0_10, %c0_11], %27 {strides = array<i32>} : memref<8x256xf32, #tpu.memory_space<vmem>>, vector<8x256xf32>,
    return
  }
  func.func @transform_0(%arg0: i32) -> (i32, i32) {
    %c0_i32 = arith.constant 0 : i32
    %c0_i32_0 = arith.constant 0 : i32
    return %arg0, %c0_i32 : i32, i32
  }
  func.func @transform_1(%arg0: i32) -> (i32, i32) {
    %c0_i32 = arith.constant 0 : i32
    %c0_i32_0 = arith.constant 0 : i32
    %c0_i32_1 = arith.constant 0 : i32
    return %c0_i32, %c0_i32_0 : i32, i32
  }
  func.func @transform_2(%arg0: i32) -> (i32, i32) {
    %c0_i32 = arith.constant 0 : i32
    %c0_i32_0 = arith.constant 0 : i32
    %c0_i32_1 = arith.constant 0 : i32
    return %c0_i32, %c0_i32_0 : i32, i32
  }
  func.func @transform_3(%arg0: i32) -> (i32, i32) {
    %c0_i32 = arith.constant 0 : i32
    %c0_i32_0 = arith.constant 0 : i32
    return %arg0, %c0_i32 : i32, i32
  }
}

</mosaic_0001>

<bundles_post_ra>
// kernel: tpu_custom_call.1
= control target key start
LH: loop header
LB: loop body
LE: loop exit
PB: predicated region body
PF: predicated region fallthrough
CT: control target
= control target key end

     0   :  { %8 = vsyncpa [#allocation3], 0  ;;  %s197_s0 = inlined_call_operand.hbm [shape: f32[8,256], index: 0, kind: input, shape index: {}]   ;;  %s198_s1 = inlined_call_operand.vmem [shape: f32[4,1], index: 1, kind: input, shape index: {}]   ;;  %s199_s2 = inlined_call_operand.vmem [shape: f32[4,1], index: 2, kind: input, shape index: {}]   ;;  %s200_s3 = inlined_call_operand.hbm [shape: f32[8,256], index: 3, kind: output, shape index: {}]  }
   0x1   :  { %9 = vsyncpa [#allocation4], 0  ;;  %s144_s12 = smov [#allocation2]   ;;  %s96_s16 = scalar_lea.hbm %s197_s0, 256 }
   0x2   :  { %s16_s13 = sshll.u32 %s144_s12, 4  ;;  %p97_p0 = scmp.ne.s32.totalorder %s197_s0, %s96_s16  ;;  %s17_s13 = int_to_ptr.vmem [resolvable:$true] %s16_s13 }
   0x3   :  { %p100_p1 = scmp.lt.u32.totalorder %s96_s16, %s197_s0 }
   0x5   :  { %p102_p2 = pnand %p100_p1, %p97_p0 }
   0x7   :  { %105 = shalt.err (!%p102_p2)
}
   0x8   :  { %s106_s21 = scalar_lea.vmem %s17_s13, 256  ;;  %p111_p4 = scmp.lt.s32.totalorder %s17_s13, %s17_s13 }
   0x9   :  { %p107_p3 = scmp.ne.s32.totalorder %s17_s13, %s106_s21  ;;  %p112_p5 = scmp.lt.s32.totalorder %s106_s21, %s106_s21 }
   0xb   :  { %p113_p6 = por %p112_p5, %p111_p4 }
   0xd   :  { %p114_p7 = pnand %p113_p6, %p107_p3 }
   0xf   :  { %117 = shalt.err (!%p114_p7)
}
  0x10   :  { %19 = dma.hbm_to_vmem [thread:$0]  %s197_s0, 256, %s17_s13, [#allocation3]  }
  0x11   :  { %140 = dma.done.wait [#allocation3], 256  }
  0x12   :  { %141 = vsyncadd [#allocation3], 4294967040  ;;  %v27_v0 = vld [vmem:[#allocation2] sm:$0xff]  ;;  %v28_v1 = vld [vmem:[#allocation2 + $0x8] sm:$0xff]  ;;  %v145_v6 = vmov 0   ;;  %vm47_vm0 = vcmask 1043456  }
  0x13   :  { %v29_v2 = vadd.f32 %v28_v1, %v27_v0  ;;  %v32_v3 = vmul.f32 %v27_v0, %v27_v0  ;;  %v33_v4 = vmul.f32 %v28_v1, %v28_v1  ;;  %92 = vset.pattern.permute.xlu1 %v145_v6  ;;  %93 = vset.pattern.permute.xlu0 %v145_v6  ;;  %v42_v15 = vld [vmem:[%s198_s1] sm:$0xf]  ;;  %s146_s27 = smov [#allocation5]  }
  0x14   :  { %v45_v16 = vrot.slane %v42_v15, 4  ;;  %v43_v17 = vld [vmem:[%s199_s2] sm:$0xf]  ;;  %s80_s28 = sshll.u32 %s146_s27, 4  ;;  %s81_s28 = int_to_ptr.vmem [resolvable:$true] %s80_s28 }
  0x15   :  { %30 = vadd.xlane.f32.xlu0 %v29_v2  ;;  %v34_v5 = vadd.f32 %v33_v4, %v32_v3  ;;  %v50_v19 = vrot.slane %v43_v17, 4  ;;  %s118_s1 = scalar_lea.vmem %s81_s28, 256  ;;  %p123_p9 = scmp.lt.s32.totalorder %s81_s28, %s81_s28 }
  0x16   :  { %v48_v18 = vsel %vm47_vm0, %v42_v15, %v45_v16  ;;  %p119_p8 = scmp.ne.s32.totalorder %s81_s28, %s118_s1  ;;  %p124_p10 = scmp.lt.s32.totalorder %s118_s1, %s118_s1 }
  0x17   :  { %v52_v22 = vsel %vm47_vm0, %v43_v17, %v50_v19 }
  0x18   :  { %p125_p11 = por %p124_p10, %p123_p9 }
  0x19   :  { %35 = vadd.xlane.f32.xlu0 %v34_v5 }
  0x1a   :  { %p126_p12 = pnand %p125_p11, %p119_p8 }
  0xa2   :  { %v31_v7 = vpop.xlane.xlu0 %30 }
  0xa3   :  { %v37_v8 = vmul.f32 0.00390625, %v31_v7 }
  0xa5   :  { %v39_v10 = vmul.f32 %v37_v8, %v37_v8 }
  0xa6   :  { %v36_v9 = vpop.xlane.xlu0 %35 }
  0xa7   :  { %v38_v11 = vmul.f32 0.00390625, %v36_v9 }
  0xa9   :  { %v40_v12 = vsub.f32 %v38_v11, %v39_v10 }
  0xab   :  { %v41_v13 = vmax.f32 %v40_v12, 0.0 }
  0xad   :  { %v53_v14 = vadd.f32 1e-05, %v41_v13 }
  0xaf   :  { %94 = vrsqrt.f32 %v53_v14 }
  0xb9   :  { %v95_v20 = vpop.eup %94 }
  0xba   :  { %v55_v21 = vmul.f32 %v95_v20, %v48_v18 }
  0xbc   :  { %60 = vperm.xlu1 %92, %v55_v21   ;;  %v56_v23 = vmul.f32 %v55_v21, %v37_v8 }
  0xbe   :  { %v57_v24 = vsub.f32 %v52_v22, %v56_v23 }
  0xc0   :  { %67 = vperm.xlu1 %92, %v57_v24  }
 0x13b   :  { %v61_v25 = vpop.permute.xlu1 %60 }
 0x13c   :  { %v63_v26 = vmul.f32 %v61_v25, %v27_v0  ;;  %v64_v27 = vmul.f32 %v61_v25, %v28_v1 }
 0x13f   :  { %v68_v28 = vpop.permute.xlu1 %67 }
 0x140   :  { %v70_v29 = vadd.f32 %v68_v28, %v63_v26  ;;  %v71_v30 = vadd.f32 %v68_v28, %v64_v27 }
 0x142   :  { %72 = vst [vmem:[#allocation5] sm:$0xff] %v70_v29  ;;  %73 = vst [vmem:[#allocation5 + $0x8] sm:$0xff] %v71_v30 }
 0x143   :  { %129 = shalt.err (!%p126_p12)
}
 0x144   :  { %s130_s30 = scalar_lea.hbm %s200_s3, 256 }
 0x145   :  { %p131_p13 = scmp.ne.s32.totalorder %s200_s3, %s130_s30  ;;  %p134_p0 = scmp.lt.u32.totalorder %s130_s30, %s200_s3 }
 0x147   :  { %p136_p1 = pnand %p134_p0, %p131_p13 }
 0x149   :  { %139 = shalt.err (!%p136_p1)
}
 0x14a   :  { %83 = dma.vmem_to_hbm [thread:$0]  %s81_s28, 256, %s200_s3, [#allocation4]  }
 0x14b   :  { %142 = dma.done.wait [#allocation4], 256  }
 0x14c   :  { %143 = vsyncadd [#allocation4], 4294967040 }
 0x14d   :  { %87 = vsyncpa [#allocation3], 1 }
 0x14e   :  { %88 = vsyncpa [#allocation4], 1 }

</bundles_post_ra>
